<compile_context>
chip_gen: v6e
topology: v6e:2x2x1
jax: 0.10.0
libtpu: 0.0.40
codegen_flags: <defaults>
</compile_context>

<pallas_src>
import jax
import jax.numpy as jnp
from jax.experimental import pallas as pl
from jax.experimental.pallas import tpu as pltpu

_LANE = 128
_SUBLANE = 8
_EPS = 1e-5


def _round_up(n, m):
    return ((n + m - 1) // m) * m


def _two_tensorcores():
    """True on chips whose grid is shared by 2 TensorCores (v7x megacore)."""
    try:
        return "v7" in jax.devices()[0].device_kind.lower()
    except Exception:
        return False


def actor_kernel(x_ref, w1_ref, pv_ref, w2_ref, w3_ref, b3_ref, o_ref):
    """One batch-tile of the Actor MLP:
       fc1 -> LN -> relu -> fc2 -> LN -> relu -> fc3 -> tanh.

    pv_ref packs (b1, g1, be1, b2, g2, be2) as rows 0..5 of an (8, H) block.
    Matmuls run on the MXU in the weights' dtype (f32 or bf16) with f32
    accumulation; LayerNorm / ReLU / tanh stay in f32 on VPU/EUP.
    """
    pv = pv_ref[...]
    b1, g1, be1 = pv[0:1, :], pv[1:2, :], pv[2:3, :]
    b2, g2, be2 = pv[3:4, :], pv[4:5, :], pv[5:6, :]

    def ln_relu(h, g, be):
        # Two-pass LayerNorm (biased variance, eps inside sqrt), affine fused
        # into a single scale: (h - mu) * (g * rsqrt(var + eps)) + be
        mu = jnp.mean(h, axis=-1, keepdims=True)
        d = h - mu
        var = jnp.mean(d * d, axis=-1, keepdims=True)
        return jnp.maximum(d * (g * jax.lax.rsqrt(var + _EPS)) + be, 0.0)

    x = x_ref[...]

    # ---- fc1 + LayerNorm + ReLU ----
    h = jnp.dot(x.astype(w1_ref.dtype), w1_ref[...],
                preferred_element_type=jnp.float32) + b1
    h = ln_relu(h, g1, be1)

    # ---- fc2 + LayerNorm + ReLU ----
    h = jnp.dot(h.astype(w2_ref.dtype), w2_ref[...],
                preferred_element_type=jnp.float32) + b2
    h = ln_relu(h, g2, be2)

    # ---- fc3 + tanh ----
    out = jnp.dot(h.astype(w3_ref.dtype), w3_ref[...],
                  preferred_element_type=jnp.float32) + b3_ref[...]
    o_ref[...] = jnp.tanh(out).astype(o_ref.dtype)


def actor_forward(x, params, *, bm=None, mxu_dtype=None):
    """x: (B, D_in) float32. params: dict of weights. Tiles over the batch."""
    B, D_in = x.shape
    H = params["w1"].shape[1]
    D_out = params["w3"].shape[1]

    # ---- lane-pad the contraction (D_in) and output (D_out) feature dims ----
    D_in_p = _round_up(D_in, _LANE)
    D_out_p = _round_up(D_out, _LANE)

    w1 = params["w1"]
    if D_in_p != D_in:
        x = jnp.pad(x, ((0, 0), (0, D_in_p - D_in)))           # zero cols
        w1 = jnp.pad(w1, ((0, D_in_p - D_in), (0, 0)))         # zero rows
    w2 = params["w2"]
    w3, b3 = params["w3"], params["b3"]
    if D_out_p != D_out:
        w3 = jnp.pad(w3, ((0, 0), (0, D_out_p - D_out)))
        b3 = jnp.pad(b3, ((0, 0), (0, D_out_p - D_out)))

    if mxu_dtype is not None:
        # MXU-only low precision; LN / tanh math stays f32 inside the kernel.
        w1, w2, w3 = (w.astype(mxu_dtype) for w in (w1, w2, w3))

    # Pack the six (1, H) bias / LayerNorm vectors into one (8, H) block.
    pv = jnp.concatenate(
        [params["b1"], params["g1"], params["be1"],
         params["b2"], params["g2"], params["be2"],
         jnp.zeros((2, H), jnp.float32)], axis=0)

    # ---- batch tiling ----
    two_tc = _two_tensorcores()
    if bm is None:
        n_steps = pl.cdiv(B, 512)                 # largest tiles, <=512 rows
        if two_tc:
            if B >= 2 * _SUBLANE:
                n_steps = max(n_steps, 2)         # give both TCs work
            if n_steps > 1 and n_steps % 2 == 1:
                n_steps += 1                      # even split across 2 TCs
        bm = max(_SUBLANE, _round_up(pl.cdiv(B, n_steps), _SUBLANE))
    grid_b = pl.cdiv(B, bm)
    if two_tc and grid_b > 1 and grid_b % 2 == 1:
        grid_b += 1                               # keep the grid even on v7x
    B_p = grid_b * bm
    if B_p != B:
        x = jnp.pad(x, ((0, B_p - B), (0, 0)))

    # ---- VMEM budget (conservative: weights counted double-buffered) ----
    wbytes = jnp.dtype(w1.dtype).itemsize
    need = (2 * bm * (D_in_p + D_out_p) * 4                      # x / out bufs
            + 2 * ((D_in_p * H + H * H + H * D_out_p) * wbytes
                   + (8 * H + D_out_p) * 4)                      # weights/params
            + 6 * bm * max(D_in_p, H, D_out_p) * 4)              # temporaries
    vmem_limit = None
    if need > 12 * 1024 * 1024:
        vmem_limit = int(min(need * 1.5, 64 * 1024 * 1024))      # valid on v7x
    cparams = pltpu.CompilerParams(
        dimension_semantics=("parallel",),
        vmem_limit_bytes=vmem_limit)

    x_map = lambda i: (i, 0)
    full_map = lambda i: (0, 0)

    def build(single_buffer_weights):
        def const_spec(shape):
            if single_buffer_weights:
                # Constant index_map -> fetched once; one buffer is enough.
                return pl.BlockSpec(shape, full_map, pipeline_mode=pl.Buffered(1))
            return pl.BlockSpec(shape, full_map)

        in_specs = [
            pl.BlockSpec((bm, D_in_p), x_map),      # x tile
            const_spec((D_in_p, H)),                # w1 (K-padded)
            const_spec((8, H)),                     # packed b1,g1,be1,b2,g2,be2
            const_spec((H, H)),                     # w2
            const_spec((H, D_out_p)),               # w3 (lane-padded)
            const_spec((1, D_out_p)),               # b3 (lane-padded)
        ]
        out_specs = pl.BlockSpec((bm, D_out_p), x_map)
        return pl.pallas_call(
            actor_kernel,
            out_shape=jax.ShapeDtypeStruct((B_p, D_out_p), jnp.float32),
            grid_spec=pl.GridSpec(grid=(grid_b,), in_specs=in_specs,
                                  out_specs=out_specs),
            compiler_params=cparams,
        )

    args = (x, w1, pv, w2, w3, b3)
    try:
        out_p = jax.block_until_ready(build(True)(*args))
    except Exception:
        # Fallback if pipeline_mode=Buffered(1) is unsupported by this JAX:
        # default double-buffered constant blocks (correct, slightly more VMEM).
        out_p = build(False)(*args)

    # Slice away batch padding and output-lane padding.
    return out_p[:B, :D_out]


def init_params(key, d_in, hidden, d_out):
    """Deterministic synthetic parameter init (shapes follow the module)."""
    ks = jax.random.split(key, 6)
    scale1 = 1.0 / jnp.sqrt(d_in)
    scale2 = 1.0 / jnp.sqrt(hidden)
    params = {
        # Linear weights stored (in, out) for direct x @ W.
        "w1": jax.random.uniform(ks[0], (d_in, hidden), jnp.float32, -scale1, scale1),
        "b1": jax.random.uniform(ks[1], (1, hidden), jnp.float32, -scale1, scale1),
        "g1": jnp.ones((1, hidden), jnp.float32),       # LayerNorm weight
        "be1": jnp.zeros((1, hidden), jnp.float32),     # LayerNorm bias
        "w2": jax.random.uniform(ks[2], (hidden, hidden), jnp.float32, -scale2, scale2),
        "b2": jax.random.uniform(ks[3], (1, hidden), jnp.float32, -scale2, scale2),
        "g2": jnp.ones((1, hidden), jnp.float32),
        "be2": jnp.zeros((1, hidden), jnp.float32),
        "w3": jax.random.uniform(ks[4], (hidden, d_out), jnp.float32, -scale2, scale2),
        "b3": jax.random.uniform(ks[5], (1, d_out), jnp.float32, -scale2, scale2),
    }
    return params


def actor_reference(x, p):
    """Pure-JAX reference mirroring the PyTorch forward, for validation."""
    def ln(h, g, b):
        mu = jnp.mean(h, -1, keepdims=True)
        var = jnp.mean((h - mu) ** 2, -1, keepdims=True)
        return (h - mu) / jnp.sqrt(var + _EPS) * g + b

    h = jax.nn.relu(ln(x @ p["w1"] + p["b1"], p["g1"], p["be1"]))
    h = jax.nn.relu(ln(h @ p["w2"] + p["b2"], p["g2"], p["be2"]))
    return jnp.tanh(h @ p["w3"] + p["b3"])


if __name__ == "__main__":
    # Small shapes consistent with the module's forward: x is (batch, features).
    B, D_IN, HIDDEN, D_OUT = 16, 16, 32, 8

    key = jax.random.PRNGKey(0)
    kx, kp = jax.random.split(key)
    x = jax.random.normal(kx, (B, D_IN), jnp.float32)
    params = init_params(kp, D_IN, HIDDEN, D_OUT)

    out = actor_forward(x, params)
    out = jax.block_until_ready(out)

    ref = actor_reference(x, params)
    assert out.shape == (B, D_OUT)
    assert jnp.allclose(out, ref, atol=1e-4, rtol=1e-4), "mismatch vs reference"

    print("KERNEL_OK")
</pallas_src>

<mosaic_0001>
module attributes {stable_mosaic.version = 11 : i64} {
  func.func @actor_kernel(%arg0: i32, %arg1: memref<16x128xf32, #tpu.memory_space<vmem>>, %arg2: memref<128x32xf32, #tpu.memory_space<vmem>>, %arg3: memref<8x32xf32, #tpu.memory_space<vmem>>, %arg4: memref<32x32xf32, #tpu.memory_space<vmem>>, %arg5: memref<32x128xf32, #tpu.memory_space<vmem>>, %arg6: memref<1x128xf32, #tpu.memory_space<vmem>>, %arg7: memref<16x128xf32, #tpu.memory_space<vmem>>) attributes {dimension_semantics = [#tpu.dimension_semantics<parallel>], iteration_bounds = array<i64: 1>, scalar_prefetch = 0 : i64, scratch_operands = 0 : i64, tpu.core_type = #tpu.core_type<tc>, window_params = [{transform_indices = @transform_0, window_bounds = array<i64: 16, 128>}, {pipeline_mode = #tpu.pipeline_mode<synchronous>, transform_indices = @transform_1, window_bounds = array<i64: 128, 32>}, {pipeline_mode = #tpu.pipeline_mode<synchronous>, transform_indices = @transform_2, window_bounds = array<i64: 8, 32>}, {pipeline_mode = #tpu.pipeline_mode<synchronous>, transform_indices = @transform_3, window_bounds = array<i64: 32, 32>}, {pipeline_mode = #tpu.pipeline_mode<synchronous>, transform_indices = @transform_4, window_bounds = array<i64: 32, 128>}, {pipeline_mode = #tpu.pipeline_mode<synchronous>, transform_indices = @transform_5, window_bounds = array<i64: 1, 128>}, {transform_indices = @transform_6, window_bounds = array<i64: 16, 128>}]} {
    %c0 = arith.constant 0 : index
    %c0_0 = arith.constant 0 : index
    %0 = vector.load %arg3[%c0, %c0_0] : memref<8x32xf32, #tpu.memory_space<vmem>>, vector<8x32xf32>
    %1 = vector.extract_strided_slice %0 {offsets = [0, 0], sizes = [1, 32], strides = [1, 1]} : vector<8x32xf32> to vector<1x32xf32>
    %2 = vector.extract_strided_slice %0 {offsets = [1, 0], sizes = [1, 32], strides = [1, 1]} : vector<8x32xf32> to vector<1x32xf32>
    %3 = vector.extract_strided_slice %0 {offsets = [2, 0], sizes = [1, 32], strides = [1, 1]} : vector<8x32xf32> to vector<1x32xf32>
    %4 = vector.extract_strided_slice %0 {offsets = [3, 0], sizes = [1, 32], strides = [1, 1]} : vector<8x32xf32> to vector<1x32xf32>
    %5 = vector.extract_strided_slice %0 {offsets = [4, 0], sizes = [1, 32], strides = [1, 1]} : vector<8x32xf32> to vector<1x32xf32>
    %6 = vector.extract_strided_slice %0 {offsets = [5, 0], sizes = [1, 32], strides = [1, 1]} : vector<8x32xf32> to vector<1x32xf32>
    %c0_1 = arith.constant 0 : index
    %c0_2 = arith.constant 0 : index
    %7 = vector.load %arg1[%c0_1, %c0_2] : memref<16x128xf32, #tpu.memory_space<vmem>>, vector<16x128xf32>
    %c0_3 = arith.constant 0 : index
    %c0_4 = arith.constant 0 : index
    %8 = vector.load %arg2[%c0_3, %c0_4] : memref<128x32xf32, #tpu.memory_space<vmem>>, vector<128x32xf32>
    %cst = arith.constant dense<0.000000e+00> : vector<16x32xf32>
    %9 = tpu.matmul %7, %8, %cst {dimension_numbers = #tpu.dot_dimension_numbers<[1], [0], [0], [1], [0, 0, 1, 1], [], []>} : vector<16x128xf32>, vector<128x32xf32>, vector<16x32xf32> -> vector<16x32xf32>
    %10 = vector.broadcast %1 : vector<1x32xf32> to vector<16x32xf32>
    %11 = arith.addf %9, %10 : vector<16x32xf32>
    %cst_5 = arith.constant dense<0.000000e+00> : vector<16xf32>
    %12 = vector.multi_reduction <add>, %11, %cst_5 [1] : vector<16x32xf32> to vector<16xf32>
    %13 = vector.shape_cast %12 : vector<16xf32> to vector<16x1xf32>
    %cst_6 = arith.constant 3.200000e+01 : f32
    %14 = vector.broadcast %cst_6 : f32 to vector<16x1xf32>
    %15 = arith.divf %13, %14 : vector<16x1xf32>
    %16 = vector.broadcast %15 : vector<16x1xf32> to vector<16x32xf32>
    %17 = arith.subf %11, %16 : vector<16x32xf32>
    %18 = arith.mulf %17, %17 : vector<16x32xf32>
    %cst_7 = arith.constant dense<0.000000e+00> : vector<16xf32>
    %19 = vector.multi_reduction <add>, %18, %cst_7 [1] : vector<16x32xf32> to vector<16xf32>
    %20 = vector.shape_cast %19 : vector<16xf32> to vector<16x1xf32>
    %cst_8 = arith.constant 3.200000e+01 : f32
    %21 = vector.broadcast %cst_8 : f32 to vector<16x1xf32>
    %22 = arith.divf %20, %21 : vector<16x1xf32>
    %cst_9 = arith.constant 9.99999974E-6 : f32
    %23 = vector.broadcast %cst_9 : f32 to vector<16x1xf32>
    %24 = arith.addf %22, %23 : vector<16x1xf32>
    %25 = math.rsqrt %24 : vector<16x1xf32>
    %26 = vector.broadcast %2 : vector<1x32xf32> to vector<16x32xf32>
    %27 = vector.broadcast %25 : vector<16x1xf32> to vector<16x32xf32>
    %28 = arith.mulf %26, %27 : vector<16x32xf32>
    %29 = arith.mulf %17, %28 : vector<16x32xf32>
    %30 = vector.broadcast %3 : vector<1x32xf32> to vector<16x32xf32>
    %31 = arith.addf %29, %30 : vector<16x32xf32>
    %cst_10 = arith.constant 0.000000e+00 : f32
    %32 = vector.broadcast %cst_10 : f32 to vector<16x32xf32>
    %33 = arith.maximumf %31, %32 : vector<16x32xf32>
    %c0_11 = arith.constant 0 : index
    %c0_12 = arith.constant 0 : index
    %34 = vector.load %arg4[%c0_11, %c0_12] : memref<32x32xf32, #tpu.memory_space<vmem>>, vector<32x32xf32>
    %cst_13 = arith.constant dense<0.000000e+00> : vector<16x32xf32>
    %35 = tpu.matmul %33, %34, %cst_13 {dimension_numbers = #tpu.dot_dimension_numbers<[1], [0], [0], [1], [0, 0, 1, 1], [], []>} : vector<16x32xf32>, vector<32x32xf32>, vector<16x32xf32> -> vector<16x32xf32>
    %36 = vector.broadcast %4 : vector<1x32xf32> to vector<16x32xf32>
    %37 = arith.addf %35, %36 : vector<16x32xf32>
    %cst_14 = arith.constant dense<0.000000e+00> : vector<16xf32>
    %38 = vector.multi_reduction <add>, %37, %cst_14 [1] : vector<16x32xf32> to vector<16xf32>
    %39 = vector.shape_cast %38 : vector<16xf32> to vector<16x1xf32>
    %cst_15 = arith.constant 3.200000e+01 : f32
    %40 = vector.broadcast %cst_15 : f32 to vector<16x1xf32>
    %41 = arith.divf %39, %40 : vector<16x1xf32>
    %42 = vector.broadcast %41 : vector<16x1xf32> to vector<16x32xf32>
    %43 = arith.subf %37, %42 : vector<16x32xf32>
    %44 = arith.mulf %43, %43 : vector<16x32xf32>
    %cst_16 = arith.constant dense<0.000000e+00> : vector<16xf32>
    %45 = vector.multi_reduction <add>, %44, %cst_16 [1] : vector<16x32xf32> to vector<16xf32>
    %46 = vector.shape_cast %45 : vector<16xf32> to vector<16x1xf32>
    %cst_17 = arith.constant 3.200000e+01 : f32
    %47 = vector.broadcast %cst_17 : f32 to vector<16x1xf32>
    %48 = arith.divf %46, %47 : vector<16x1xf32>
    %cst_18 = arith.constant 9.99999974E-6 : f32
    %49 = vector.broadcast %cst_18 : f32 to vector<16x1xf32>
    %50 = arith.addf %48, %49 : vector<16x1xf32>
    %51 = math.rsqrt %50 : vector<16x1xf32>
    %52 = vector.broadcast %5 : vector<1x32xf32> to vector<16x32xf32>
    %53 = vector.broadcast %51 : vector<16x1xf32> to vector<16x32xf32>
    %54 = arith.mulf %52, %53 : vector<16x32xf32>
    %55 = arith.mulf %43, %54 : vector<16x32xf32>
    %56 = vector.broadcast %6 : vector<1x32xf32> to vector<16x32xf32>
    %57 = arith.addf %55, %56 : vector<16x32xf32>
    %cst_19 = arith.constant 0.000000e+00 : f32
    %58 = vector.broadcast %cst_19 : f32 to vector<16x32xf32>
    %59 = arith.maximumf %57, %58 : vector<16x32xf32>
    %c0_20 = arith.constant 0 : index
    %c0_21 = arith.constant 0 : index
    %60 = vector.load %arg5[%c0_20, %c0_21] : memref<32x128xf32, #tpu.memory_space<vmem>>, vector<32x128xf32>
    %cst_22 = arith.constant dense<0.000000e+00> : vector<16x128xf32>
    %61 = tpu.matmul %59, %60, %cst_22 {dimension_numbers = #tpu.dot_dimension_numbers<[1], [0], [0], [1], [0, 0, 1, 1], [], []>} : vector<16x32xf32>, vector<32x128xf32>, vector<16x128xf32> -> vector<16x128xf32>
    %c0_23 = arith.constant 0 : index
    %c0_24 = arith.constant 0 : index
    %62 = vector.load %arg6[%c0_23, %c0_24] : memref<1x128xf32, #tpu.memory_space<vmem>>, vector<1x128xf32>
    %63 = vector.broadcast %62 : vector<1x128xf32> to vector<16x128xf32>
    %64 = arith.addf %61, %63 : vector<16x128xf32>
    %65 = math.tanh %64 : vector<16x128xf32>
    %c0_25 = arith.constant 0 : index
    %c0_26 = arith.constant 0 : index
    %66 = vector.load %arg7[%c0_25, %c0_26] : memref<16x128xf32, #tpu.memory_space<vmem>>, vector<16x128xf32>
    tpu.vector_store %arg7[%c0_25, %c0_26], %65 {strides = array<i32>} : memref<16x128xf32, #tpu.memory_space<vmem>>, vector<16x128xf32>,
    return
  }
  func.func @transform_0(%arg0: i32) -> (i32, i32) {
    %c0_i32 = arith.constant 0 : i32
    %c0_i32_0 = arith.constant 0 : i32
    return %arg0, %c0_i32 : i32, i32
  }
  func.func @transform_1(%arg0: i32) -> (i32, i32) {
    %c0_i32 = arith.constant 0 : i32
    %c0_i32_0 = arith.constant 0 : i32
    %c0_i32_1 = arith.constant 0 : i32
    return %c0_i32, %c0_i32_0 : i32, i32
  }
  func.func @transform_2(%arg0: i32) -> (i32, i32) {
    %c0_i32 = arith.constant 0 : i32
    %c0_i32_0 = arith.constant 0 : i32
    %c0_i32_1 = arith.constant 0 : i32
    return %c0_i32, %c0_i32_0 : i32, i32
  }
  func.func @transform_3(%arg0: i32) -> (i32, i32) {
    %c0_i32 = arith.constant 0 : i32
    %c0_i32_0 = arith.constant 0 : i32
    %c0_i32_1 = arith.constant 0 : i32
    return %c0_i32, %c0_i32_0 : i32, i32
  }
  func.func @transform_4(%arg0: i32) -> (i32, i32) {
    %c0_i32 = arith.constant 0 : i32
    %c0_i32_0 = arith.constant 0 : i32
    %c0_i32_1 = arith.constant 0 : i32
    return %c0_i32, %c0_i32_0 : i32, i32
  }
  func.func @transform_5(%arg0: i32) -> (i32, i32) {
    %c0_i32 = arith.constant 0 : i32
    %c0_i32_0 = arith.constant 0 : i32
    %c0_i32_1 = arith.constant 0 : i32
    return %c0_i32, %c0_i32_0 : i32, i32
  }
  func.func @transform_6(%arg0: i32) -> (i32, i32) {
    %c0_i32 = arith.constant 0 : i32
    %c0_i32_0 = arith.constant 0 : i32
    return %arg0, %c0_i32 : i32, i32
  }
}

module attributes {stable_mosaic.version = 11 : i64} {
  func.func @actor_kernel(%arg0: i32, %arg1: memref<16x128xf32, #tpu.memory_space<vmem>>, %arg2: memref<128x32xf32, #tpu.memory_space<vmem>>, %arg3: memref<8x32xf32, #tpu.memory_space<vmem>>, %arg4: memref<32x32xf32, #tpu.memory_space<vmem>>, %arg5: memref<32x128xf32, #tpu.memory_space<vmem>>, %arg6: memref<1x128xf32, #tpu.memory_space<vmem>>, %arg7: memref<16x128xf32, #tpu.memory_space<vmem>>) attributes {dimension_semantics = [#tpu.dimension_semantics<parallel>], iteration_bounds = array<i64: 1>, scalar_prefetch = 0 : i64, scratch_operands = 0 : i64, tpu.core_type = #tpu.core_type<tc>, window_params = [{transform_indices = @transform_0, window_bounds = array<i64: 16, 128>}, {pipeline_mode = #tpu.pipeline_mode<synchronous>, transform_indices = @transform_1, window_bounds = array<i64: 128, 32>}, {pipeline_mode = #tpu.pipeline_mode<synchronous>, transform_indices = @transform_2, window_bounds = array<i64: 8, 32>}, {pipeline_mode = #tpu.pipeline_mode<synchronous>, transform_indices = @transform_3, window_bounds = array<i64: 32, 32>}, {pipeline_mode = #tpu.pipeline_mode<synchronous>, transform_indices = @transform_4, window_bounds = array<i64: 32, 128>}, {pipeline_mode = #tpu.pipeline_mode<synchronous>, transform_indices = @transform_5, window_bounds = array<i64: 1, 128>}, {transform_indices = @transform_6, window_bounds = array<i64: 16, 128>}]} {
    %c0 = arith.constant 0 : index
    %c0_0 = arith.constant 0 : index
    %0 = vector.load %arg3[%c0, %c0_0] : memref<8x32xf32, #tpu.memory_space<vmem>>, vector<8x32xf32>
    %1 = vector.extract_strided_slice %0 {offsets = [0, 0], sizes = [1, 32], strides = [1, 1]} : vector<8x32xf32> to vector<1x32xf32>
    %2 = vector.extract_strided_slice %0 {offsets = [1, 0], sizes = [1, 32], strides = [1, 1]} : vector<8x32xf32> to vector<1x32xf32>
    %3 = vector.extract_strided_slice %0 {offsets = [2, 0], sizes = [1, 32], strides = [1, 1]} : vector<8x32xf32> to vector<1x32xf32>
    %4 = vector.extract_strided_slice %0 {offsets = [3, 0], sizes = [1, 32], strides = [1, 1]} : vector<8x32xf32> to vector<1x32xf32>
    %5 = vector.extract_strided_slice %0 {offsets = [4, 0], sizes = [1, 32], strides = [1, 1]} : vector<8x32xf32> to vector<1x32xf32>
    %6 = vector.extract_strided_slice %0 {offsets = [5, 0], sizes = [1, 32], strides = [1, 1]} : vector<8x32xf32> to vector<1x32xf32>
    %c0_1 = arith.constant 0 : index
    %c0_2 = arith.constant 0 : index
    %7 = vector.load %arg1[%c0_1, %c0_2] : memref<16x128xf32, #tpu.memory_space<vmem>>, vector<16x128xf32>
    %c0_3 = arith.constant 0 : index
    %c0_4 = arith.constant 0 : index
    %8 = vector.load %arg2[%c0_3, %c0_4] : memref<128x32xf32, #tpu.memory_space<vmem>>, vector<128x32xf32>
    %cst = arith.constant dense<0.000000e+00> : vector<16x32xf32>
    %9 = tpu.matmul %7, %8, %cst {dimension_numbers = #tpu.dot_dimension_numbers<[1], [0], [0], [1], [0, 0, 1, 1], [], []>} : vector<16x128xf32>, vector<128x32xf32>, vector<16x32xf32> -> vector<16x32xf32>
    %10 = vector.broadcast %1 : vector<1x32xf32> to vector<16x32xf32>
    %11 = arith.addf %9, %10 : vector<16x32xf32>
    %cst_5 = arith.constant dense<0.000000e+00> : vector<16xf32>
    %12 = vector.multi_reduction <add>, %11, %cst_5 [1] : vector<16x32xf32> to vector<16xf32>
    %13 = vector.shape_cast %12 : vector<16xf32> to vector<16x1xf32>
    %cst_6 = arith.constant 3.200000e+01 : f32
    %14 = vector.broadcast %cst_6 : f32 to vector<16x1xf32>
    %15 = arith.divf %13, %14 : vector<16x1xf32>
    %16 = vector.broadcast %15 : vector<16x1xf32> to vector<16x32xf32>
    %17 = arith.subf %11, %16 : vector<16x32xf32>
    %18 = arith.mulf %17, %17 : vector<16x32xf32>
    %cst_7 = arith.constant dense<0.000000e+00> : vector<16xf32>
    %19 = vector.multi_reduction <add>, %18, %cst_7 [1] : vector<16x32xf32> to vector<16xf32>
    %20 = vector.shape_cast %19 : vector<16xf32> to vector<16x1xf32>
    %cst_8 = arith.constant 3.200000e+01 : f32
    %21 = vector.broadcast %cst_8 : f32 to vector<16x1xf32>
    %22 = arith.divf %20, %21 : vector<16x1xf32>
    %cst_9 = arith.constant 9.99999974E-6 : f32
    %23 = vector.broadcast %cst_9 : f32 to vector<16x1xf32>
    %24 = arith.addf %22, %23 : vector<16x1xf32>
    %25 = math.rsqrt %24 : vector<16x1xf32>
    %26 = vector.broadcast %2 : vector<1x32xf32> to vector<16x32xf32>
    %27 = vector.broadcast %25 : vector<16x1xf32> to vector<16x32xf32>
    %28 = arith.mulf %26, %27 : vector<16x32xf32>
    %29 = arith.mulf %17, %28 : vector<16x32xf32>
    %30 = vector.broadcast %3 : vector<1x32xf32> to vector<16x32xf32>
    %31 = arith.addf %29, %30 : vector<16x32xf32>
    %cst_10 = arith.constant 0.000000e+00 : f32
    %32 = vector.broadcast %cst_10 : f32 to vector<16x32xf32>
    %33 = arith.maximumf %31, %32 : vector<16x32xf32>
    %c0_11 = arith.constant 0 : index
    %c0_12 = arith.constant 0 : index
    %34 = vector.load %arg4[%c0_11, %c0_12] : memref<32x32xf32, #tpu.memory_space<vmem>>, vector<32x32xf32>
    %cst_13 = arith.constant dense<0.000000e+00> : vector<16x32xf32>
    %35 = tpu.matmul %33, %34, %cst_13 {dimension_numbers = #tpu.dot_dimension_numbers<[1], [0], [0], [1], [0, 0, 1, 1], [], []>} : vector<16x32xf32>, vector<32x32xf32>, vector<16x32xf32> -> vector<16x32xf32>
    %36 = vector.broadcast %4 : vector<1x32xf32> to vector<16x32xf32>
    %37 = arith.addf %35, %36 : vector<16x32xf32>
    %cst_14 = arith.constant dense<0.000000e+00> : vector<16xf32>
    %38 = vector.multi_reduction <add>, %37, %cst_14 [1] : vector<16x32xf32> to vector<16xf32>
    %39 = vector.shape_cast %38 : vector<16xf32> to vector<16x1xf32>
    %cst_15 = arith.constant 3.200000e+01 : f32
    %40 = vector.broadcast %cst_15 : f32 to vector<16x1xf32>
    %41 = arith.divf %39, %40 : vector<16x1xf32>
    %42 = vector.broadcast %41 : vector<16x1xf32> to vector<16x32xf32>
    %43 = arith.subf %37, %42 : vector<16x32xf32>
    %44 = arith.mulf %43, %43 : vector<16x32xf32>
    %cst_16 = arith.constant dense<0.000000e+00> : vector<16xf32>
    %45 = vector.multi_reduction <add>, %44, %cst_16 [1] : vector<16x32xf32> to vector<16xf32>
    %46 = vector.shape_cast %45 : vector<16xf32> to vector<16x1xf32>
    %cst_17 = arith.constant 3.200000e+01 : f32
    %47 = vector.broadcast %cst_17 : f32 to vector<16x1xf32>
    %48 = arith.divf %46, %47 : vector<16x1xf32>
    %cst_18 = arith.constant 9.99999974E-6 : f32
    %49 = vector.broadcast %cst_18 : f32 to vector<16x1xf32>
    %50 = arith.addf %48, %49 : vector<16x1xf32>
    %51 = math.rsqrt %50 : vector<16x1xf32>
    %52 = vector.broadcast %5 : vector<1x32xf32> to vector<16x32xf32>
    %53 = vector.broadcast %51 : vector<16x1xf32> to vector<16x32xf32>
    %54 = arith.mulf %52, %53 : vector<16x32xf32>
    %55 = arith.mulf %43, %54 : vector<16x32xf32>
    %56 = vector.broadcast %6 : vector<1x32xf32> to vector<16x32xf32>
    %57 = arith.addf %55, %56 : vector<16x32xf32>
    %cst_19 = arith.constant 0.000000e+00 : f32
    %58 = vector.broadcast %cst_19 : f32 to vector<16x32xf32>
    %59 = arith.maximumf %57, %58 : vector<16x32xf32>
    %c0_20 = arith.constant 0 : index
    %c0_21 = arith.constant 0 : index
    %60 = vector.load %arg5[%c0_20, %c0_21] : memref<32x128xf32, #tpu.memory_space<vmem>>, vector<32x128xf32>
    %cst_22 = arith.constant dense<0.000000e+00> : vector<16x128xf32>
    %61 = tpu.matmul %59, %60, %cst_22 {dimension_numbers = #tpu.dot_dimension_numbers<[1], [0], [0], [1], [0, 0, 1, 1], [], []>} : vector<16x32xf32>, vector<32x128xf32>, vector<16x128xf32> -> vector<16x128xf32>
    %c0_23 = arith.constant 0 : index
    %c0_24 = arith.constant 0 : index
    %62 = vector.load %arg6[%c0_23, %c0_24] : memref<1x128xf32, #tpu.memory_space<vmem>>, vector<1x128xf32>
    %63 = vector.broadcast %62 : vector<1x128xf32> to vector<16x128xf32>
    %64 = arith.addf %61, %63 : vector<16x128xf32>
    %65 = math.tanh %64 : vector<16x128xf32>
    %c0_25 = arith.constant 0 : index
    %c0_26 = arith.constant 0 : index
    %66 = vector.load %arg7[%c0_25, %c0_26] : memref<16x128xf32, #tpu.memory_space<vmem>>, vector<16x128xf32>
    tpu.vector_store %arg7[%c0_25, %c0_26], %65 {strides = array<i32>} : memref<16x128xf32, #tpu.memory_space<vmem>>, vector<16x128xf32>,
    return
  }
  func.func @transform_0(%arg0: i32) -> (i32, i32) {
    %c0_i32 = arith.constant 0 : i32
    %c0_i32_0 = arith.constant 0 : i32
    return %arg0, %c0_i32 : i32, i32
  }
  func.func @transform_1(%arg0: i32) -> (i32, i32) {
    %c0_i32 = arith.constant 0 : i32
    %c0_i32_0 = arith.constant 0 : i32
    %c0_i32_1 = arith.constant 0 : i32
    return %c0_i32, %c0_i32_0 : i32, i32
  }
  func.func @transform_2(%arg0: i32) -> (i32, i32) {
    %c0_i32 = arith.constant 0 : i32
    %c0_i32_0 = arith.constant 0 : i32
    %c0_i32_1 = arith.constant 0 : i32
    return %c0_i32, %c0_i32_0 : i32, i32
  }
  func.func @transform_3(%arg0: i32) -> (i32, i32) {
    %c0_i32 = arith.constant 0 : i32
    %c0_i32_0 = arith.constant 0 : i32
    %c0_i32_1 = arith.constant 0 : i32
    return %c0_i32, %c0_i32_0 : i32, i32
  }
  func.func @transform_4(%arg0: i32) -> (i32, i32) {
    %c0_i32 = arith.constant 0 : i32
    %c0_i32_0 = arith.constant 0 : i32
    %c0_i32_1 = arith.constant 0 : i32
    return %c0_i32, %c0_i32_0 : i32, i32
  }
  func.func @transform_5(%arg0: i32) -> (i32, i32) {
    %c0_i32 = arith.constant 0 : i32
    %c0_i32_0 = arith.constant 0 : i32
    %c0_i32_1 = arith.constant 0 : i32
    return %c0_i32, %c0_i32_0 : i32, i32
  }
  func.func @transform_6(%arg0: i32) -> (i32, i32) {
    %c0_i32 = arith.constant 0 : i32
    %c0_i32_0 = arith.constant 0 : i32
    return %arg0, %c0_i32 : i32, i32
  }
}

</mosaic_0001>

<bundles_post_ra>
// kernel: tpu_custom_call.1
= control target key start
LH: loop header
LB: loop body
LE: loop exit
PB: predicated region body
PF: predicated region fallthrough
CT: control target
= control target key end

     0   :  { %s687_s0 = inlined_call_operand.vmem [shape: f32[16,128], index: 0, kind: input, shape index: {}]   ;;  %s688_s1 = inlined_call_operand.vmem [shape: f32[128,32], index: 1, kind: input, shape index: {}]   ;;  %s689_s2 = inlined_call_operand.vmem [shape: f32[8,32], index: 2, kind: input, shape index: {}]   ;;  %s690_s3 = inlined_call_operand.vmem [shape: f32[32,32], index: 3, kind: input, shape index: {}]   ;;  %s691_s4 = inlined_call_operand.vmem [shape: f32[32,128], index: 4, kind: input, shape index: {}]   ;;  %s692_s5 = inlined_call_operand.vmem [shape: f32[1,128], index: 5, kind: input, shape index: {}]   ;;  %s693_s6 = inlined_call_operand.hbm [shape: f32[16,128], index: 6, kind: output, shape index: {}]  }
   0x1   :  { %v42_v0 = vld [vmem:[%s688_s1 + $0x78] sm:$0xff]  ;;  %v41_v1 = vld [vmem:[%s688_s1 + $0x70] sm:$0xff]  ;;  %v40_v2 = vld [vmem:[%s688_s1 + $0x68] sm:$0xff] }
   0x2   :  { %440 = vmatprep.subr.mxu0 %v42_v0  ;;  %v39_v3 = vld [vmem:[%s688_s1 + $0x60] sm:$0xff]  ;;  %v38_v5 = vld [vmem:[%s688_s1 + $0x58] sm:$0xff] }
   0x3   :  { %441 = vmatpush3.msra.mxu0 %v42_v0  ;;  %v25_v4 = vld [vmem:[%s687_s0] sm:$0xff] }
   0x4   :  { %442 = vmatprep.subr.mxu0 %v41_v1  ;;  %472 = vmatprep.mubr.f32.mxu0 %v25_v4 }
   0x5   :  { %443 = vmatpush3.msra.mxu0 %v41_v1 }
   0x6   :  { %444 = vmatprep.subr.mxu0 %v40_v2 }
   0x7   :  { %445 = vmatpush3.msra.mxu0 %v40_v2 }
   0x8   :  { %11 = vsyncpa [#allocation3], 0  ;;  %446 = vmatprep.subr.mxu0 %v39_v3  ;;  %v37_v6 = vld [vmem:[%s688_s1 + $0x50] sm:$0xff]  ;;  %v36_v7 = vld [vmem:[%s688_s1 + $0x48] sm:$0xff]  ;;  %v43_v18 = vlaneseq  ;;  %vm122_vm0 = vcmask 261120   ;;  %s534_s24 = smov [#allocation2]  }
   0x9   :  { %447 = vmatpush3.msra.mxu0 %v39_v3  ;;  %v35_v8 = vld [vmem:[%s688_s1 + $0x40] sm:$0xff]  ;;  %v34_v9 = vld [vmem:[%s688_s1 + $0x38] sm:$0xff]  ;;  %v33_v10 = vld [vmem:[%s688_s1 + $0x30] sm:$0xff]  ;;  %s394_s25 = sshll.u32 %s534_s24, 4  ;;  %s395_s25 = int_to_ptr.vmem [resolvable:$true] %s394_s25 }
   0xa   :  { %448 = vmatprep.subr.mxu0 %v38_v5  ;;  %v32_v11 = vld [vmem:[%s688_s1 + $0x28] sm:$0xff]  ;;  %v31_v12 = vld [vmem:[%s688_s1 + $0x20] sm:$0xff]  ;;  %v30_v13 = vld [vmem:[%s688_s1 + $0x18] sm:$0xff]  ;;  %v626_v19 = vshrl.u32 %v43_v18, 7  ;;  %s512_s26 = scalar_lea.vmem %s395_s25, 256  ;;  %p517_p1 = scmp.lt.s32.totalorder %s395_s25, %s395_s25 }
   0xb   :  { %449 = vmatpush3.msra.mxu0 %v38_v5  ;;  %v29_v14 = vld [vmem:[%s688_s1 + $0x10] sm:$0xff]  ;;  %v28_v15 = vld [vmem:[%s688_s1 + $0x8] sm:$0xff]  ;;  %v27_v16 = vld [vmem:[%s688_s1] sm:$0xff]  ;;  %p513_p0 = scmp.ne.s32.totalorder %s395_s25, %s512_s26  ;;  %p518_p2 = scmp.lt.s32.totalorder %s512_s26, %s512_s26 }
   0xc   :  { %450 = vmatprep.subr.mxu0 %v37_v6  ;;  %v26_v17 = vld [vmem:[%s687_s0 + $0x8] sm:$0xff]  ;;  %v45_v20 = vsub.s32 0, %v626_v19  ;;  %v632_v21 = vld [vmem:[%s689_s2] sm:$0xff]  ;;  %v167_v39 = vld [vmem:[%s690_s3 + $0x18] sm:$0xff]  ;;  %v150_v49 = vsub.s32 1, %v626_v19  ;;  %v158_v51 = vsub.s32 2, %v626_v19 }
   0xd   :  { %451 = vmatpush3.msra.mxu0 %v37_v6  ;;  %v166_v40 = vld [vmem:[%s690_s3 + $0x10] sm:$0xff]  ;;  %475 = vmatprep.subr.mxu1 %v167_v39  ;;  %v165_v41 = vld [vmem:[%s690_s3 + $0x8] sm:$0xff]  ;;  %v164_v42 = vld [vmem:[%s690_s3] sm:$0xff]  ;;  %v170_v63 = vsub.s32 3, %v626_v19  ;;  %p519_p3 = por %p518_p2, %p517_p1 }
   0xe   :  { %452 = vmatprep.subr.mxu0 %v36_v7  ;;  %v46_v23 = vrot.slane %v632_v21, %v45_v20  ;;  %476 = vmatpush3.msra.mxu1 %v167_v39  ;;  %v151_v50 = vrot.slane %v632_v21, %v150_v49  ;;  %v159_v54 = vrot.slane %v632_v21, %v158_v51  ;;  %v295_v18 = vld [vmem:[%s691_s4 + $0x10] sm:$0xff]  ;;  %v294_v20 = vld [vmem:[%s691_s4 + $0x8] sm:$0xff] }
   0xf   :  { %453 = vmatpush3.msra.mxu0 %v36_v7  ;;  %477 = vmatprep.subr.mxu1 %v166_v40  ;;  %v171_v0 = vrot.slane %v632_v21, %v170_v63  ;;  %p520_p4 = pnand %p519_p3, %p513_p0 }
  0x10   :  { %454 = vmatprep.subr.mxu0 %v35_v8  ;;  %478 = vmatpush3.msra.mxu1 %v166_v40 }
  0x11   :  { %455 = vmatpush3.msra.mxu0 %v35_v8  ;;  %479 = vmatprep.subr.mxu1 %v165_v41 }
  0x12   :  { %456 = vmatprep.subr.mxu0 %v34_v9  ;;  %480 = vmatpush3.msra.mxu1 %v165_v41 }
  0x13   :  { %457 = vmatpush3.msra.mxu0 %v34_v9  ;;  %481 = vmatprep.subr.mxu1 %v164_v42 }
  0x14   :  { %458 = vmatprep.subr.mxu0 %v33_v10  ;;  %482 = vmatpush3.msra.mxu1 %v164_v42 }
  0x15   :  { %459 = vmatpush3.msra.mxu0 %v33_v10 }
  0x16   :  { %460 = vmatprep.subr.mxu0 %v32_v11 }
  0x17   :  { %461 = vmatpush3.msra.mxu0 %v32_v11 }
  0x18   :  { %462 = vmatprep.subr.mxu0 %v31_v12 }
  0x19   :  { %463 = vmatpush3.msra.mxu0 %v31_v12 }
  0x1a   :  { %464 = vmatprep.subr.mxu0 %v30_v13 }
  0x1b   :  { %465 = vmatpush3.msra.mxu0 %v30_v13 }
  0x1c   :  { %466 = vmatprep.subr.mxu0 %v29_v14 }
  0x1d   :  { %467 = vmatpush3.msra.mxu0 %v29_v14 }
  0x1e   :  { %468 = vmatprep.subr.mxu0 %v28_v15 }
  0x1f   :  { %469 = vmatpush3.msra.mxu0 %v28_v15 }
  0x20   :  { %470 = vmatprep.subr.mxu0 %v27_v16 }
  0x21   :  { %471 = vmatpush3.msra.mxu0 %v27_v16 }
  0x22   :  { %473 = vmatmul.mubr.f32.vlgmr.msra.gmra.mxu0 %v26_v17  ;;  %v296_v17 = vld [vmem:[%s691_s4 + $0x18] sm:$0xff] }
  0x23   :  { %486 = vmatprep.subr.mxu1 %v296_v17 }
  0xe2   :  { %v474_v22 = vpop.f32.mrf.mxu0 }
  0xe3   :  { %v119_v26 = vadd.f32 %v474_v22, %v46_v23  ;;  %v293_v22 = vld [vmem:[%s691_s4] sm:$0xff] }
  0xe4   :  { %v113_v24 = vpop.f32.mrf.mxu0 }
  0xe5   :  { %v114_v25 = vadd.f32 %v113_v24, %v46_v23  ;;  %v126_v28 = vsel %vm122_vm0, %v119_v26, 0.0 }
  0xe7   :  { %v123_v27 = vsel %vm122_vm0, %v114_v25, 0.0 }
  0xe8   :  { %124 = vadd.xlane.f32.xlu0 %v123_v27 }
  0xec   :  { %127 = vadd.xlane.f32.xlu0 %v126_v28 }
 0x171   :  { %v125_v29 = vpop.xlane.xlu0 %124 }
 0x172   :  { %v130_v30 = vmul.f32 0.03125, %v125_v29  ;;  %v279_v29 = vsub.s32 4, %v626_v19 }
 0x174   :  { %v132_v31 = vsub.f32 %v114_v25, %v130_v30  ;;  %v280_v30 = vrot.slane %v632_v21, %v279_v29 }
 0x175   :  { %v128_v32 = vpop.xlane.xlu0 %127 }
 0x176   :  { %v131_v33 = vmul.f32 0.03125, %v128_v32  ;;  %v134_v34 = vmul.f32 %v132_v31, %v132_v31 }
 0x178   :  { %v133_v35 = vsub.f32 %v119_v26, %v131_v33  ;;  %v136_v36 = vsel %vm122_vm0, %v134_v34, 0.0 }
 0x179   :  { %137 = vadd.xlane.f32.xlu1 %v136_v36 }
 0x17a   :  { %v135_v37 = vmul.f32 %v133_v35, %v133_v35 }
 0x17c   :  { %v139_v38 = vsel %vm122_vm0, %v135_v37, 0.0 }
 0x17d   :  { %140 = vadd.xlane.f32.xlu1 %v139_v38 }
 0x202   :  { %v138_v43 = vpop.xlane.xlu1 %137 }
 0x203   :  { %v142_v44 = vmul.f32 0.03125, %v138_v43 }
 0x205   :  { %v144_v45 = vadd.f32 1e-05, %v142_v44 }
 0x206   :  { %v141_v46 = vpop.xlane.xlu1 %140 }
 0x207   :  { %500 = vrsqrt.f32 %v144_v45  ;;  %v143_v47 = vmul.f32 0.03125, %v141_v46 }
 0x209   :  { %v145_v48 = vadd.f32 1e-05, %v143_v47 }
 0x20b   :  { %502 = vrsqrt.f32 %v145_v48 }
 0x214   :  { %v501_v52 = vpop.eup %500 }
 0x215   :  { %v152_v53 = vmul.f32 %v501_v52, %v151_v50 }
 0x217   :  { %v154_v55 = vmul.f32 %v152_v53, %v132_v31  ;;  %v287_v31 = vsub.s32 5, %v626_v19  ;;  %v407_v19 = vld [vmem:[%s692_s5] ss:$0 sm:$0xff] }
 0x218   :  { %v503_v56 = vpop.eup %502 }
 0x219   :  { %v153_v57 = vmul.f32 %v503_v56, %v151_v50  ;;  %v160_v58 = vadd.f32 %v159_v54, %v154_v55 }
 0x21b   :  { %v155_v59 = vmul.f32 %v153_v57, %v133_v35  ;;  %v162_v60 = vmax.f32 %v160_v58, 0.0  ;;  %v288_v35 = vrot.slane %v632_v21, %v287_v31 }
 0x21d   :  { %v161_v61 = vadd.f32 %v159_v54, %v155_v59  ;;  %483 = vmatprep.mubr.msk.f32.mxu1 %vm122_vm0, %v162_v60 }
 0x21f   :  { %v163_v62 = vmax.f32 %v161_v61, 0.0 }
 0x221   :  { %484 = vmatmul.mubr.msk.f32.vlgmr.msra.gmra.mxu1 %vm122_vm0, %v163_v62 }
 0x222   :  { %487 = vmatpush3.msra.mxu1 %v296_v17 }
 0x223   :  { %488 = vmatprep.subr.mxu1 %v295_v18 }
 0x224   :  { %489 = vmatpush3.msra.mxu1 %v295_v18 }
 0x225   :  { %490 = vmatprep.subr.mxu1 %v294_v20 }
 0x226   :  { %491 = vmatpush3.msra.mxu1 %v294_v20 }
 0x227   :  { %492 = vmatprep.subr.mxu1 %v293_v22 }
 0x228   :  { %493 = vmatpush3.msra.mxu1 %v293_v22 }
 0x2e1   :  { %v485_v1 = vpop.f32.mrf.mxu1 }
 0x2e2   :  { %v250_v2 = vadd.f32 %v485_v1, %v171_v0 }
 0x2e3   :  { %v244_v3 = vpop.f32.mrf.mxu1 }
 0x2e4   :  { %v245_v4 = vadd.f32 %v244_v3, %v171_v0  ;;  %v256_v5 = vsel %vm122_vm0, %v250_v2, 0.0 }
 0x2e5   :  { %257 = vadd.xlane.f32.xlu1 %v256_v5 }
 0x2e6   :  { %v253_v6 = vsel %vm122_vm0, %v245_v4, 0.0 }
 0x2e7   :  { %254 = vadd.xlane.f32.xlu0 %v253_v6 }
 0x36e   :  { %v258_v7 = vpop.xlane.xlu1 %257 }
 0x36f   :  { %v260_v8 = vmul.f32 0.03125, %v258_v7 }
 0x370   :  { %v255_v9 = vpop.xlane.xlu0 %254 }
 0x371   :  { %v262_v10 = vsub.f32 %v250_v2, %v260_v8  ;;  %v259_v11 = vmul.f32 0.03125, %v255_v9 }
 0x373   :  { %v261_v12 = vsub.f32 %v245_v4, %v259_v11  ;;  %v264_v13 = vmul.f32 %v262_v10, %v262_v10 }
 0x375   :  { %v268_v14 = vsel %vm122_vm0, %v264_v13, 0.0  ;;  %v263_v15 = vmul.f32 %v261_v12, %v261_v12 }
 0x376   :  { %269 = vadd.xlane.f32.xlu1 %v268_v14 }
 0x377   :  { %v265_v16 = vsel %vm122_vm0, %v263_v15, 0.0 }
 0x378   :  { %266 = vadd.xlane.f32.xlu0 %v265_v16 }
 0x3ff   :  { %v270_v23 = vpop.xlane.xlu1 %269 }
 0x400   :  { %v272_v24 = vmul.f32 0.03125, %v270_v23 }
 0x401   :  { %v267_v25 = vpop.xlane.xlu0 %266 }
 0x402   :  { %v274_v26 = vadd.f32 1e-05, %v272_v24  ;;  %v271_v27 = vmul.f32 0.03125, %v267_v25 }
 0x404   :  { %504 = vrsqrt.f32 %v274_v26  ;;  %v273_v28 = vadd.f32 1e-05, %v271_v27 }
 0x406   :  { %506 = vrsqrt.f32 %v273_v28 }
 0x411   :  { %v505_v32 = vpop.eup %504 }
 0x412   :  { %v282_v33 = vmul.f32 %v505_v32, %v280_v30 }
 0x413   :  { %v507_v34 = vpop.eup %506 }
 0x414   :  { %v281_v36 = vmul.f32 %v507_v34, %v280_v30  ;;  %v284_v37 = vmul.f32 %v282_v33, %v262_v10 }
 0x416   :  { %v283_v38 = vmul.f32 %v281_v36, %v261_v12  ;;  %v290_v39 = vadd.f32 %v288_v35, %v284_v37 }
 0x418   :  { %v289_v40 = vadd.f32 %v288_v35, %v283_v38  ;;  %v292_v42 = vmax.f32 %v290_v39, 0.0 }
 0x41a   :  { %v291_v41 = vmax.f32 %v289_v40, 0.0 }
 0x41c   :  { %494 = vmatprep.mubr.msk.f32.mxu1 %vm122_vm0, %v291_v41 }
 0x41d   :  { %495 = vmatmul.mubr.msk.f32.vlgmr.msra.gmra.mxu1 %vm122_vm0, %v292_v42 }
 0x4dd   :  { %v496_v43 = vpop.f32.mrf.mxu1 }
 0x4de   :  { %v382_v44 = vadd.f32 %v496_v43, %v407_v19 }
 0x4df   :  { %v376_v45 = vpop.f32.mrf.mxu1 }
 0x4e0   :  { %508 = vtanh.f32 %v382_v44  ;;  %v377_v21 = vadd.f32 %v407_v19, %v376_v45 }
 0x4e2   :  { %510 = vtanh.f32 %v377_v21 }
 0x4ed   :  { %v509_v46 = vpop.eup %508 }
 0x4ee   :  { %388 = vst [vmem:[#allocation2 + $0x8] sm:$0xff] %v509_v46 }
 0x4ef   :  { %v511_v47 = vpop.eup %510 }
 0x4f0   :  { %387 = vst [vmem:[#allocation2] sm:$0xff] %v511_v47 }
 0x4f1   :  { %523 = shalt.err (!%p520_p4)
}
 0x4f2   :  { %s535_s5 = smov 128   ;;  %s536_s27 = smov 8  }
 0x4f3   :  { %400 = dma.vmem_to_hbm [thread:$0]  %s395_s25, 256, %s693_s6, [#allocation3], %s535_s5, %s535_s5, %s536_s27  }
 0x4f4   :  { %532 = dma.done.wait [#allocation3], 256  }
 0x4f5   :  { %533 = vsyncadd [#allocation3], 4294967040 }
 0x4f6   :  { %404 = vsyncpa [#allocation3], 1 }

// kernel: tpu_custom_call.1
= control target key start
LH: loop header
LB: loop body
LE: loop exit
PB: predicated region body
PF: predicated region fallthrough
CT: control target
= control target key end

     0   :  { %s687_s0 = inlined_call_operand.vmem [shape: f32[16,128], index: 0, kind: input, shape index: {}]   ;;  %s688_s1 = inlined_call_operand.vmem [shape: f32[128,32], index: 1, kind: input, shape index: {}]   ;;  %s689_s2 = inlined_call_operand.vmem [shape: f32[8,32], index: 2, kind: input, shape index: {}]   ;;  %s690_s3 = inlined_call_operand.vmem [shape: f32[32,32], index: 3, kind: input, shape index: {}]   ;;  %s691_s4 = inlined_call_operand.vmem [shape: f32[32,128], index: 4, kind: input, shape index: {}]   ;;  %s692_s5 = inlined_call_operand.vmem [shape: f32[1,128], index: 5, kind: input, shape index: {}]   ;;  %s693_s6 = inlined_call_operand.hbm [shape: f32[16,128], index: 6, kind: output, shape index: {}]  }
   0x1   :  { %v42_v0 = vld [vmem:[%s688_s1 + $0x78] sm:$0xff]  ;;  %v41_v1 = vld [vmem:[%s688_s1 + $0x70] sm:$0xff]  ;;  %v40_v2 = vld [vmem:[%s688_s1 + $0x68] sm:$0xff] }
   0x2   :  { %440 = vmatprep.subr.mxu0 %v42_v0  ;;  %v39_v3 = vld [vmem:[%s688_s1 + $0x60] sm:$0xff]  ;;  %v38_v5 = vld [vmem:[%s688_s1 + $0x58] sm:$0xff] }
   0x3   :  { %441 = vmatpush3.msra.mxu0 %v42_v0  ;;  %v25_v4 = vld [vmem:[%s687_s0] sm:$0xff] }
   0x4   :  { %442 = vmatprep.subr.mxu0 %v41_v1  ;;  %472 = vmatprep.mubr.f32.mxu0 %v25_v4 }
   0x5   :  { %443 = vmatpush3.msra.mxu0 %v41_v1 }
   0x6   :  { %444 = vmatprep.subr.mxu0 %v40_v2 }
   0x7   :  { %445 = vmatpush3.msra.mxu0 %v40_v2 }
   0x8   :  { %11 = vsyncpa [#allocation3], 0  ;;  %446 = vmatprep.subr.mxu0 %v39_v3  ;;  %v37_v6 = vld [vmem:[%s688_s1 + $0x50] sm:$0xff]  ;;  %v36_v7 = vld [vmem:[%s688_s1 + $0x48] sm:$0xff]  ;;  %v43_v18 = vlaneseq  ;;  %vm122_vm0 = vcmask 261120   ;;  %s534_s24 = smov [#allocation2]  }
   0x9   :  { %447 = vmatpush3.msra.mxu0 %v39_v3  ;;  %v35_v8 = vld [vmem:[%s688_s1 + $0x40] sm:$0xff]  ;;  %v34_v9 = vld [vmem:[%s688_s1 + $0x38] sm:$0xff]  ;;  %v33_v10 = vld [vmem:[%s688_s1 + $0x30] sm:$0xff]  ;;  %s394_s25 = sshll.u32 %s534_s24, 4  ;;  %s395_s25 = int_to_ptr.vmem [resolvable:$true] %s394_s25 }
   0xa   :  { %448 = vmatprep.subr.mxu0 %v38_v5  ;;  %v32_v11 = vld [vmem:[%s688_s1 + $0x28] sm:$0xff]  ;;  %v31_v12 = vld [vmem:[%s688_s1 + $0x20] sm:$0xff]  ;;  %v30_v13 = vld [vmem:[%s688_s1 + $0x18] sm:$0xff]  ;;  %v626_v19 = vshrl.u32 %v43_v18, 7  ;;  %s512_s26 = scalar_lea.vmem %s395_s25, 256  ;;  %p517_p1 = scmp.lt.s32.totalorder %s395_s25, %s395_s25 }
   0xb   :  { %449 = vmatpush3.msra.mxu0 %v38_v5  ;;  %v29_v14 = vld [vmem:[%s688_s1 + $0x10] sm:$0xff]  ;;  %v28_v15 = vld [vmem:[%s688_s1 + $0x8] sm:$0xff]  ;;  %v27_v16 = vld [vmem:[%s688_s1] sm:$0xff]  ;;  %p513_p0 = scmp.ne.s32.totalorder %s395_s25, %s512_s26  ;;  %p518_p2 = scmp.lt.s32.totalorder %s512_s26, %s512_s26 }
   0xc   :  { %450 = vmatprep.subr.mxu0 %v37_v6  ;;  %v26_v17 = vld [vmem:[%s687_s0 + $0x8] sm:$0xff]  ;;  %v45_v20 = vsub.s32 0, %v626_v19  ;;  %v632_v21 = vld [vmem:[%s689_s2] sm:$0xff]  ;;  %v167_v39 = vld [vmem:[%s690_s3 + $0x18] sm:$0xff]  ;;  %v150_v49 = vsub.s32 1, %v626_v19  ;;  %v158_v51 = vsub.s32 2, %v626_v19 }
   0xd   :  { %451 = vmatpush3.msra.mxu0 %v37_v6  ;;  %v166_v40 = vld [vmem:[%s690_s3 + $0x10] sm:$0xff]  ;;  %475 = vmatprep.subr.mxu1 %v167_v39  ;;  %v165_v41 = vld [vmem:[%s690_s3 + $0x8] sm:$0xff]  ;;  %v164_v42 = vld [vmem:[%s690_s3] sm:$0xff]  ;;  %v170_v63 = vsub.s32 3, %v626_v19  ;;  %p519_p3 = por %p518_p2, %p517_p1 }
   0xe   :  { %452 = vmatprep.subr.mxu0 %v36_v7  ;;  %v46_v23 = vrot.slane %v632_v21, %v45_v20  ;;  %476 = vmatpush3.msra.mxu1 %v167_v39  ;;  %v151_v50 = vrot.slane %v632_v21, %v150_v49  ;;  %v159_v54 = vrot.slane %v632_v21, %v158_v51  ;;  %v295_v18 = vld [vmem:[%s691_s4 + $0x10] sm:$0xff]  ;;  %v294_v20 = vld [vmem:[%s691_s4 + $0x8] sm:$0xff] }
   0xf   :  { %453 = vmatpush3.msra.mxu0 %v36_v7  ;;  %477 = vmatprep.subr.mxu1 %v166_v40  ;;  %v171_v0 = vrot.slane %v632_v21, %v170_v63  ;;  %p520_p4 = pnand %p519_p3, %p513_p0 }
  0x10   :  { %454 = vmatprep.subr.mxu0 %v35_v8  ;;  %478 = vmatpush3.msra.mxu1 %v166_v40 }
  0x11   :  { %455 = vmatpush3.msra.mxu0 %v35_v8  ;;  %479 = vmatprep.subr.mxu1 %v165_v41 }
  0x12   :  { %456 = vmatprep.subr.mxu0 %v34_v9  ;;  %480 = vmatpush3.msra.mxu1 %v165_v41 }
  0x13   :  { %457 = vmatpush3.msra.mxu0 %v34_v9  ;;  %481 = vmatprep.subr.mxu1 %v164_v42 }
  0x14   :  { %458 = vmatprep.subr.mxu0 %v33_v10  ;;  %482 = vmatpush3.msra.mxu1 %v164_v42 }
  0x15   :  { %459 = vmatpush3.msra.mxu0 %v33_v10 }
  0x16   :  { %460 = vmatprep.subr.mxu0 %v32_v11 }
  0x17   :  { %461 = vmatpush3.msra.mxu0 %v32_v11 }
  0x18   :  { %462 = vmatprep.subr.mxu0 %v31_v12 }
  0x19   :  { %463 = vmatpush3.msra.mxu0 %v31_v12 }
  0x1a   :  { %464 = vmatprep.subr.mxu0 %v30_v13 }
  0x1b   :  { %465 = vmatpush3.msra.mxu0 %v30_v13 }
  0x1c   :  { %466 = vmatprep.subr.mxu0 %v29_v14 }
  0x1d   :  { %467 = vmatpush3.msra.mxu0 %v29_v14 }
  0x1e   :  { %468 = vmatprep.subr.mxu0 %v28_v15 }
  0x1f   :  { %469 = vmatpush3.msra.mxu0 %v28_v15 }
  0x20   :  { %470 = vmatprep.subr.mxu0 %v27_v16 }
  0x21   :  { %471 = vmatpush3.msra.mxu0 %v27_v16 }
  0x22   :  { %473 = vmatmul.mubr.f32.vlgmr.msra.gmra.mxu0 %v26_v17  ;;  %v296_v17 = vld [vmem:[%s691_s4 + $0x18] sm:$0xff] }
  0x23   :  { %486 = vmatprep.subr.mxu1 %v296_v17 }
  0xe2   :  { %v474_v22 = vpop.f32.mrf.mxu0 }
  0xe3   :  { %v119_v26 = vadd.f32 %v474_v22, %v46_v23  ;;  %v293_v22 = vld [vmem:[%s691_s4] sm:$0xff] }
  0xe4   :  { %v113_v24 = vpop.f32.mrf.mxu0 }
  0xe5   :  { %v114_v25 = vadd.f32 %v113_v24, %v46_v23  ;;  %v126_v28 = vsel %vm122_vm0, %v119_v26, 0.0 }
  0xe7   :  { %v123_v27 = vsel %vm122_vm0, %v114_v25, 0.0 }
  0xe8   :  { %124 = vadd.xlane.f32.xlu0 %v123_v27 }
  0xec   :  { %127 = vadd.xlane.f32.xlu0 %v126_v28 }
 0x171   :  { %v125_v29 = vpop.xlane.xlu0 %124 }
 0x172   :  { %v130_v30 = vmul.f32 0.03125, %v125_v29  ;;  %v279_v29 = vsub.s32 4, %v626_v19 }
 0x174   :  { %v132_v31 = vsub.f32 %v114_v25, %v130_v30  ;;  %v280_v30 = vrot.slane %v632_v21, %v279_v29 }
 0x175   :  { %v128_v32 = vpop.xlane.xlu0 %127 }
 0x176   :  { %v131_v33 = vmul.f32 0.03125, %v128_v32  ;;  %v134_v34 = vmul.f32 %v132_v31, %v132_v31 }
 0x178   :  { %v133_v35 = vsub.f32 %v119_v26, %v131_v33  ;;  %v136_v36 = vsel %vm122_vm0, %v134_v34, 0.0 }
 0x179   :  { %137 = vadd.xlane.f32.xlu1 %v136_v36 }
 0x17a   :  { %v135_v37 = vmul.f32 %v133_v35, %v133_v35 }
 0x17c   :  { %v139_v38 = vsel %vm122_vm0, %v135_v37, 0.0 }
 0x17d   :  { %140 = vadd.xlane.f32.xlu1 %v139_v38 }
 0x202   :  { %v138_v43 = vpop.xlane.xlu1 %137 }
 0x203   :  { %v142_v44 = vmul.f32 0.03125, %v138_v43 }
 0x205   :  { %v144_v45 = vadd.f32 1e-05, %v142_v44 }
 0x206   :  { %v141_v46 = vpop.xlane.xlu1 %140 }
 0x207   :  { %500 = vrsqrt.f32 %v144_v45  ;;  %v143_v47 = vmul.f32 0.03125, %v141_v46 }
 0x209   :  { %v145_v48 = vadd.f32 1e-05, %v143_v47 }
 0x20b   :  { %502 = vrsqrt.f32 %v145_v48 }
 0x214   :  { %v501_v52 = vpop.eup %500 }
 0x215   :  { %v152_v53 = vmul.f32 %v501_v52, %v151_v50 }
 0x217   :  { %v154_v55 = vmul.f32 %v152_v53, %v132_v31  ;;  %v287_v31 = vsub.s32 5, %v626_v19  ;;  %v407_v19 = vld [vmem:[%s692_s5] ss:$0 sm:$0xff] }
 0x218   :  { %v503_v56 = vpop.eup %502 }
 0x219   :  { %v153_v57 = vmul.f32 %v503_v56, %v151_v50  ;;  %v160_v58 = vadd.f32 %v159_v54, %v154_v55 }
 0x21b   :  { %v155_v59 = vmul.f32 %v153_v57, %v133_v35  ;;  %v162_v60 = vmax.f32 %v160_v58, 0.0  ;;  %v288_v35 = vrot.slane %v632_v21, %v287_v31 }
 0x21d   :  { %v161_v61 = vadd.f32 %v159_v54, %v155_v59  ;;  %483 = vmatprep.mubr.msk.f32.mxu1 %vm122_vm0, %v162_v60 }
 0x21f   :  { %v163_v62 = vmax.f32 %v161_v61, 0.0 }
 0x221   :  { %484 = vmatmul.mubr.msk.f32.vlgmr.msra.gmra.mxu1 %vm122_vm0, %v163_v62 }
 0x222   :  { %487 = vmatpush3.msra.mxu1 %v296_v17 }
 0x223   :  { %488 = vmatprep.subr.mxu1 %v295_v18 }
 0x224   :  { %489 = vmatpush3.msra.mxu1 %v295_v18 }
 0x225   :  { %490 = vmatprep.subr.mxu1 %v294_v20 }
 0x226   :  { %491 = vmatpush3.msra.mxu1 %v294_v20 }
 0x227   :  { %492 = vmatprep.subr.mxu1 %v293_v22 }
 0x228   :  { %493 = vmatpush3.msra.mxu1 %v293_v22 }
 0x2e1   :  { %v485_v1 = vpop.f32.mrf.mxu1 }
 0x2e2   :  { %v250_v2 = vadd.f32 %v485_v1, %v171_v0 }
 0x2e3   :  { %v244_v3 = vpop.f32.mrf.mxu1 }
 0x2e4   :  { %v245_v4 = vadd.f32 %v244_v3, %v171_v0  ;;  %v256_v5 = vsel %vm122_vm0, %v250_v2, 0.0 }
 0x2e5   :  { %257 = vadd.xlane.f32.xlu1 %v256_v5 }
 0x2e6   :  { %v253_v6 = vsel %vm122_vm0, %v245_v4, 0.0 }
 0x2e7   :  { %254 = vadd.xlane.f32.xlu0 %v253_v6 }
 0x36e   :  { %v258_v7 = vpop.xlane.xlu1 %257 }
 0x36f   :  { %v260_v8 = vmul.f32 0.03125, %v258_v7 }
 0x370   :  { %v255_v9 = vpop.xlane.xlu0 %254 }
 0x371   :  { %v262_v10 = vsub.f32 %v250_v2, %v260_v8  ;;  %v259_v11 = vmul.f32 0.03125, %v255_v9 }
 0x373   :  { %v261_v12 = vsub.f32 %v245_v4, %v259_v11  ;;  %v264_v13 = vmul.f32 %v262_v10, %v262_v10 }
 0x375   :  { %v268_v14 = vsel %vm122_vm0, %v264_v13, 0.0  ;;  %v263_v15 = vmul.f32 %v261_v12, %v261_v12 }
 0x376   :  { %269 = vadd.xlane.f32.xlu1 %v268_v14 }
 0x377   :  { %v265_v16 = vsel %vm122_vm0, %v263_v15, 0.0 }
 0x378   :  { %266 = vadd.xlane.f32.xlu0 %v265_v16 }
 0x3ff   :  { %v270_v23 = vpop.xlane.xlu1 %269 }
 0x400   :  { %v272_v24 = vmul.f32 0.03125, %v270_v23 }
 0x401   :  { %v267_v25 = vpop.xlane.xlu0 %266 }
 0x402   :  { %v274_v26 = vadd.f32 1e-05, %v272_v24  ;;  %v271_v27 = vmul.f32 0.03125, %v267_v25 }
 0x404   :  { %504 = vrsqrt.f32 %v274_v26  ;;  %v273_v28 = vadd.f32 1e-05, %v271_v27 }
 0x406   :  { %506 = vrsqrt.f32 %v273_v28 }
 0x411   :  { %v505_v32 = vpop.eup %504 }
 0x412   :  { %v282_v33 = vmul.f32 %v505_v32, %v280_v30 }
 0x413   :  { %v507_v34 = vpop.eup %506 }
 0x414   :  { %v281_v36 = vmul.f32 %v507_v34, %v280_v30  ;;  %v284_v37 = vmul.f32 %v282_v33, %v262_v10 }
 0x416   :  { %v283_v38 = vmul.f32 %v281_v36, %v261_v12  ;;  %v290_v39 = vadd.f32 %v288_v35, %v284_v37 }
 0x418   :  { %v289_v40 = vadd.f32 %v288_v35, %v283_v38  ;;  %v292_v42 = vmax.f32 %v290_v39, 0.0 }
 0x41a   :  { %v291_v41 = vmax.f32 %v289_v40, 0.0 }
 0x41c   :  { %494 = vmatprep.mubr.msk.f32.mxu1 %vm122_vm0, %v291_v41 }
 0x41d   :  { %495 = vmatmul.mubr.msk.f32.vlgmr.msra.gmra.mxu1 %vm122_vm0, %v292_v42 }
 0x4dd   :  { %v496_v43 = vpop.f32.mrf.mxu1 }
 0x4de   :  { %v382_v44 = vadd.f32 %v496_v43, %v407_v19 }
 0x4df   :  { %v376_v45 = vpop.f32.mrf.mxu1 }
 0x4e0   :  { %508 = vtanh.f32 %v382_v44  ;;  %v377_v21 = vadd.f32 %v407_v19, %v376_v45 }
 0x4e2   :  { %510 = vtanh.f32 %v377_v21 }
 0x4ed   :  { %v509_v46 = vpop.eup %508 }
 0x4ee   :  { %388 = vst [vmem:[#allocation2 + $0x8] sm:$0xff] %v509_v46 }
 0x4ef   :  { %v511_v47 = vpop.eup %510 }
 0x4f0   :  { %387 = vst [vmem:[#allocation2] sm:$0xff] %v511_v47 }
 0x4f1   :  { %523 = shalt.err (!%p520_p4)
}
 0x4f2   :  { %s535_s5 = smov 128   ;;  %s536_s27 = smov 8  }
 0x4f3   :  { %400 = dma.vmem_to_hbm [thread:$0]  %s395_s25, 256, %s693_s6, [#allocation3], %s535_s5, %s535_s5, %s536_s27  }
 0x4f4   :  { %532 = dma.done.wait [#allocation3], 256  }
 0x4f5   :  { %533 = vsyncadd [#allocation3], 4294967040 }
 0x4f6   :  { %404 = vsyncpa [#allocation3], 1 }

</bundles_post_ra>
